<compile_context>
chip_gen: v7x
topology: tpu7x:2x2x1
jax: 0.10.0
libtpu: 0.0.40
codegen_flags: <defaults>
</compile_context>

<pallas_src>
import jax
import jax.numpy as jnp
from jax.experimental import pallas as pl
from jax.experimental.pallas import tpu as pltpu


def _round_up(x: int, m: int) -> int:
    return ((x + m - 1) // m) * m


def _exact_bf16_planes(x_f32: jax.Array) -> jax.Array:
    """Split an f32 array into three bf16 planes with x == hi + mid + lo exactly
    (for normal f32 values; subnormals may flush).  Lets the kernel gather with
    native bf16 MXU matmuls while still reproducing the f32 rows bit-exactly."""
    hi = x_f32.astype(jnp.bfloat16)
    r1 = x_f32 - hi.astype(jnp.float32)
    mid = r1.astype(jnp.bfloat16)
    r2 = r1 - mid.astype(jnp.float32)
    lo = r2.astype(jnp.bfloat16)
    return jnp.stack([hi, mid, lo], axis=0)  # (3, rows, cols) bf16


def _kg_onehot_gather_kernel(idx_ref, planes_ref, out_ref):
    # idx_ref:    VMEM (tile, 1) int32, remapped (-1 -> E) and clamped.
    # planes_ref: VMEM (3, e_pad, d_pad) bf16 -- exact hi/mid/lo split of the
    #             f32 table (+UNK row at E); constant index_map -> resident.
    # out_ref:    VMEM (tile, d_pad) f32 -- one unmasked full-tile store.
    tile = out_ref.shape[0]
    e_pad = planes_ref.shape[1]

    # Full-tile one-hot row selector on the MXU's K dimension.
    row_ids = jax.lax.broadcasted_iota(jnp.int32, (tile, e_pad), 1)
    onehot = jnp.where(row_ids == idx_ref[...], 1.0, 0.0).astype(jnp.bfloat16)

    # Three bf16 matmuls with f32 accumulation; each picks out one bf16 plane
    # row exactly (sum of zeros + one value).  (hi + mid) + lo == f32 row
    # bit-exactly by construction of the split.
    hi = jnp.dot(onehot, planes_ref[0], preferred_element_type=jnp.float32)
    mid = jnp.dot(onehot, planes_ref[1], preferred_element_type=jnp.float32)
    lo = jnp.dot(onehot, planes_ref[2], preferred_element_type=jnp.float32)
    out_ref[...] = (hi + mid) + lo


def kg_embedding_lookup(table: jax.Array, unk: jax.Array, idx: jax.Array,
                        *, tile: int = 256) -> jax.Array:
    """table: (E, D) f32, unk: (D,) f32, idx: int array with values in [-1, E-1]."""
    E, D = table.shape
    orig_shape = idx.shape
    idx_flat = idx.reshape(-1).astype(jnp.int32)
    N = idx_flat.shape[0]

    # Fold the trainable UNK row into the table as row E; remap -1 -> E and
    # clamp everything else into [0, E-1].  NOTE: like the PyTorch module we
    # assume idx in [-1, E-1]; values >= E are clamped to E-1 instead of raising.
    table_ext = jnp.concatenate([table, unk.reshape(1, D)], axis=0)  # (E+1, D)
    idx_safe = jnp.where(idx_flat == -1, E,
                         jnp.clip(idx_flat, 0, E - 1)).astype(jnp.int32)

    # Pad rows + embedding dim to multiples of 128: lane-aligned one-hot
    # operand and lane-dense (unmasked) output writebacks.
    e_pad = _round_up(E + 1, 128)
    d_pad = _round_up(D, 128)
    table_ext = jnp.pad(table_ext, ((0, e_pad - (E + 1)), (0, d_pad - D)))
    planes = _exact_bf16_planes(table_ext)            # (3, e_pad, d_pad) bf16

    # Pad indices to whole tiles (padding gathers row 0; sliced off below) and
    # lay them out as a (n_pad, 1) column so each grid step reads one
    # (tile, 1) VMEM block -- no scalar prefetch, no SMEM size ceiling.
    n_tiles = pl.cdiv(N, tile)
    n_pad = n_tiles * tile
    idx_safe = jnp.pad(idx_safe, (0, n_pad - N)).reshape(n_pad, 1)

    # Generation-aware VMEM budget (v7x: 64 MiB/TensorCore; v5e/v6e: 128 MiB).
    try:
        vmem_cap = int(getattr(pltpu.get_tpu_info(), "vmem_capacity_bytes",
                               64 * 1024 * 1024))
    except Exception:
        vmem_cap = 64 * 1024 * 1024
    vmem_limit = min((vmem_cap * 3) // 4, 100 * 1024 * 1024)

    planes_bytes = 3 * e_pad * d_pad * 2              # bf16
    out_block_bytes = tile * d_pad * 4
    idx_block_bytes = tile * 4
    # Default pipelining double-buffers every operand (the resident planes are
    # DMA'd once but still get two buffers), so budget 2x for them.
    # TODO(synk): single-buffer the resident planes via pipeline_mode=pl.Buffered(1)
    #   (halves their VMEM footprint near the cap) and add an HBM-gather fallback
    #   (memory_space=pl.ANY + manual make_async_copy double-buffering, or a
    #   jnp.take path) for tables too large for the resident one-hot approach.
    vmem_needed = (2 * planes_bytes + 2 * (out_block_bytes + idx_block_bytes)
                   + (1 << 20))
    assert vmem_needed <= vmem_limit, (
        f"resident-VMEM one-hot gather needs ~{vmem_needed} B but the budget is "
        f"{vmem_limit} B; large tables need the HBM-gather fallback")
    assert e_pad <= 8192, (
        "one-hot MXU gather is only efficient for small/medium tables")

    out = pl.pallas_call(
        _kg_onehot_gather_kernel,
        out_shape=jax.ShapeDtypeStruct((n_pad, d_pad), jnp.float32),
        grid=(n_tiles,),
        in_specs=[
            # (tile, 1) index column per grid step.
            pl.BlockSpec((tile, 1), lambda t: (t, 0)),
            # Whole table planes as one block; constant index_map -> DMA'd once
            # and kept resident in VMEM across all grid steps.
            pl.BlockSpec((3, e_pad, d_pad), lambda t: (0, 0, 0)),
        ],
        out_specs=pl.BlockSpec((tile, d_pad), lambda t: (t, 0)),
        compiler_params=pltpu.CompilerParams(
            dimension_semantics=("parallel",),
            vmem_limit_bytes=vmem_limit,
        ),
        cost_estimate=pl.CostEstimate(
            flops=2 * 3 * n_pad * e_pad * d_pad,
            transcendentals=0,
            bytes_accessed=planes_bytes + n_pad * d_pad * 4 + n_pad * 4,
        ),
    )(idx_safe, planes)

    return out[:N, :D].reshape(*orig_shape, D)


if __name__ == "__main__":
    num_entities = 64
    dim = 128  # lane-aligned embedding dim

    key = jax.random.PRNGKey(0)
    k_tab, k_unk = jax.random.split(key)

    # Deterministic synthetic "mem-mapped" table and trainable UNK parameter.
    table = jax.random.normal(k_tab, (num_entities, dim), dtype=jnp.float32)
    unk = 0.02 * jax.random.normal(k_unk, (dim,), dtype=jnp.float32)

    # Small idx batch (2, 8) with some -1 (UNK) entries.
    idx = jnp.array(
        [[0, 5, -1, 17, 63, -1, 2, 9],
         [-1, 1, 1, 42, 7, 30, -1, 63]],
        dtype=jnp.int32,
    )

    out = kg_embedding_lookup(table, unk, idx)
    out = jax.block_until_ready(out)

    # Pure-JAX reference of the exact PyTorch semantics.
    ref = jnp.where(
        (idx == -1)[..., None],
        unk[None, None, :],
        table[jnp.maximum(idx, 0)],
    )
    assert out.shape == idx.shape + (dim,)
    assert bool(jnp.allclose(out, ref, rtol=1e-6, atol=1e-6)), "mismatch vs reference"

    print("KERNEL_OK")
</pallas_src>

<mosaic_0001>
module attributes {stable_mosaic.version = 11 : i64} {
  func.func @_kg_onehot_gather_kernel(%arg0: i32, %arg1: memref<256x1xi32, #tpu.memory_space<vmem>>, %arg2: memref<3x128x128xbf16, #tpu.memory_space<vmem>>, %arg3: memref<256x128xf32, #tpu.memory_space<vmem>>) attributes {dimension_semantics = [#tpu.dimension_semantics<parallel>], iteration_bounds = array<i64: 1>, scalar_prefetch = 0 : i64, scratch_operands = 0 : i64, tpu.core_type = #tpu.core_type<tc>, window_params = [{transform_indices = @transform_0, window_bounds = array<i64: 256, 1>}, {pipeline_mode = #tpu.pipeline_mode<synchronous>, transform_indices = @transform_1, window_bounds = array<i64: 3, 128, 128>}, {transform_indices = @transform_2, window_bounds = array<i64: 256, 128>}]} {
    %0 = tpu.iota {dimensions = array<i32: 1>} : vector<256x128xi32>
    %c0 = arith.constant 0 : index
    %c0_0 = arith.constant 0 : index
    %1 = vector.load %arg1[%c0, %c0_0] : memref<256x1xi32, #tpu.memory_space<vmem>>, vector<256x1xi32>
    %2 = vector.broadcast %1 : vector<256x1xi32> to vector<256x128xi32>
    %3 = arith.cmpi eq, %0, %2 : vector<256x128xi32>
    %cst = arith.constant 1.000000e+00 : f32
    %cst_1 = arith.constant 0.000000e+00 : f32
    %4 = vector.broadcast %cst : f32 to vector<256x128xf32>
    %5 = vector.broadcast %cst_1 : f32 to vector<256x128xf32>
    %6 = arith.select %3, %4, %5 : vector<256x128xi1>, vector<256x128xf32>
    %7 = arith.truncf %6 : vector<256x128xf32> to vector<256x128xbf16>
    %c0_2 = arith.constant 0 : index
    %c0_3 = arith.constant 0 : index
    %c0_4 = arith.constant 0 : index
    %8 = vector.load %arg2[%c0_2, %c0_3, %c0_4] : memref<3x128x128xbf16, #tpu.memory_space<vmem>>, vector<1x128x128xbf16>
    %9 = vector.shape_cast %8 : vector<1x128x128xbf16> to vector<128x128xbf16>
    %cst_5 = arith.constant dense<0.000000e+00> : vector<256x128xf32>
    %10 = tpu.matmul %7, %9, %cst_5 {dimension_numbers = #tpu.dot_dimension_numbers<[1], [0], [0], [1], [0, 0, 1, 1], [], []>} : vector<256x128xbf16>, vector<128x128xbf16>, vector<256x128xf32> -> vector<256x128xf32>
    %c1 = arith.constant 1 : index
    %c0_6 = arith.constant 0 : index
    %c0_7 = arith.constant 0 : index
    %11 = vector.load %arg2[%c1, %c0_6, %c0_7] : memref<3x128x128xbf16, #tpu.memory_space<vmem>>, vector<1x128x128xbf16>
    %12 = vector.shape_cast %11 : vector<1x128x128xbf16> to vector<128x128xbf16>
    %cst_8 = arith.constant dense<0.000000e+00> : vector<256x128xf32>
    %13 = tpu.matmul %7, %12, %cst_8 {dimension_numbers = #tpu.dot_dimension_numbers<[1], [0], [0], [1], [0, 0, 1, 1], [], []>} : vector<256x128xbf16>, vector<128x128xbf16>, vector<256x128xf32> -> vector<256x128xf32>
    %c2 = arith.constant 2 : index
    %c0_9 = arith.constant 0 : index
    %c0_10 = arith.constant 0 : index
    %14 = vector.load %arg2[%c2, %c0_9, %c0_10] : memref<3x128x128xbf16, #tpu.memory_space<vmem>>, vector<1x128x128xbf16>
    %15 = vector.shape_cast %14 : vector<1x128x128xbf16> to vector<128x128xbf16>
    %cst_11 = arith.constant dense<0.000000e+00> : vector<256x128xf32>
    %16 = tpu.matmul %7, %15, %cst_11 {dimension_numbers = #tpu.dot_dimension_numbers<[1], [0], [0], [1], [0, 0, 1, 1], [], []>} : vector<256x128xbf16>, vector<128x128xbf16>, vector<256x128xf32> -> vector<256x128xf32>
    %17 = arith.addf %10, %13 : vector<256x128xf32>
    %18 = arith.addf %17, %16 : vector<256x128xf32>
    %c0_12 = arith.constant 0 : index
    %c0_13 = arith.constant 0 : index
    %19 = vector.load %arg3[%c0_12, %c0_13] : memref<256x128xf32, #tpu.memory_space<vmem>>, vector<256x128xf32>
    tpu.vector_store %arg3[%c0_12, %c0_13], %18 {strides = array<i32>} : memref<256x128xf32, #tpu.memory_space<vmem>>, vector<256x128xf32>,
    return
  }
  func.func @transform_0(%arg0: i32) -> (i32, i32) {
    %c0_i32 = arith.constant 0 : i32
    %c0_i32_0 = arith.constant 0 : i32
    return %arg0, %c0_i32 : i32, i32
  }
  func.func @transform_1(%arg0: i32) -> (i32, i32, i32) {
    %c0_i32 = arith.constant 0 : i32
    %c0_i32_0 = arith.constant 0 : i32
    %c0_i32_1 = arith.constant 0 : i32
    %c0_i32_2 = arith.constant 0 : i32
    return %c0_i32, %c0_i32_0, %c0_i32_1 : i32, i32, i32
  }
  func.func @transform_2(%arg0: i32) -> (i32, i32) {
    %c0_i32 = arith.constant 0 : i32
    %c0_i32_0 = arith.constant 0 : i32
    return %arg0, %c0_i32 : i32, i32
  }
}

</mosaic_0001>

<bundles_post_ra>
// kernel: tpu_custom_call.1
= control target key start
LH: loop header
LB: loop body
LE: loop exit
PB: predicated region body
PF: predicated region fallthrough
CT: control target
= control target key end

     0   :  { %v1483_v2 = vmov 0   ;;  %s1973_s0 = inlined_call_operand.vmem [shape: s32[256,1], index: 0, kind: input, shape index: {}]   ;;  %s1974_s1 = inlined_call_operand.vmem [shape: bf16[3,128,128], index: 1, kind: input, shape index: {}]   ;;  %s1975_s2 = inlined_call_operand.hbm [shape: f32[256,128], index: 2, kind: output, shape index: {}]  }
   0x1   :  { %v17_v0 = vld [vmem:[%s1973_s0 + $0x10] sm:$0xff]  ;;  %v15_v1 = vld [vmem:[%s1973_s0] sm:$0xff]  ;;  %1434 = vset.pattern.permute.xlu1 %v1483_v2  ;;  %1433 = vset.pattern.permute.xlu0 %v1483_v2  ;;  %v18_v3 = vld [vmem:[%s1973_s0 + $0x18] sm:$0xff] }
   0x2   :  { %54 = vperm.xlu1 %1434, %v17_v0   ;;  %48 = vperm.xlu0 %1433, %v15_v1   ;;  %v16_v4 = vld [vmem:[%s1973_s0 + $0x8] sm:$0xff]  ;;  %v19_v6 = vld [vmem:[%s1973_s0 + $0x20] sm:$0xff]  ;;  %v22_v7 = vld [vmem:[%s1973_s0 + $0x38] sm:$0xff] }
   0x3   :  { %v20_v5 = vld [vmem:[%s1973_s0 + $0x28] sm:$0xff]  ;;  %v21_v8 = vld [vmem:[%s1973_s0 + $0x30] sm:$0xff]  ;;  %v1435_v9 = vld [vmem:[%s1974_s1 + $0x40] sm:$0xff]  }
   0x4   :  { %v1533_v10 = vld [vmem:[%s1974_s1 + $0x80] sm:$0xff]   ;;  %v24_v11 = vld [vmem:[%s1973_s0 + $0x48] sm:$0xff]  ;;  %1204 = vmatprep.subr.bf16.mxu1 %v1435_v9  ;;  %v1439_v15 = vld [vmem:[%s1974_s1 + $0x50] sm:$0xff]  }
   0x5   :  { %v1437_v12 = vld [vmem:[%s1974_s1 + $0x48] sm:$0xff]   ;;  %v23_v14 = vld [vmem:[%s1973_s0 + $0x40] sm:$0xff]  ;;  %1252 = vmatprep.subr.bf16.mxu0 %v1533_v10  ;;  %1205 = vmatpush3.bf16.msra.mxu1 %v1435_v9  ;;  %v1558_v16 = vld [vmem:[%s1974_s1 + $0x90] sm:$0xff]  }
   0x6   :  { %57 = vperm.xlu1 %1434, %v18_v3   ;;  %51 = vperm.xlu0 %1433, %v16_v4   ;;  %v1544_v13 = vld [vmem:[%s1974_s1 + $0x88] sm:$0xff]   ;;  %v26_v17 = vld [vmem:[%s1973_s0 + $0x58] sm:$0xff]  ;;  %v25_v18 = vld [vmem:[%s1973_s0 + $0x50] sm:$0xff] }
   0x7   :  { %1253 = vmatpush3.bf16.msra.mxu0 %v1533_v10  ;;  %1206 = vmatprep.subr.bf16.mxu1 %v1437_v12  ;;  %v1441_v19 = vld [vmem:[%s1974_s1 + $0x58] sm:$0xff]   ;;  %v28_v21 = vld [vmem:[%s1973_s0 + $0x68] sm:$0xff]  ;;  %v27_v22 = vld [vmem:[%s1973_s0 + $0x60] sm:$0xff] }
   0x8   :  { %1254 = vmatprep.subr.bf16.mxu0 %v1544_v13  ;;  %v1574_v20 = vld [vmem:[%s1974_s1 + $0x98] sm:$0xff]   ;;  %v1443_v23 = vld [vmem:[%s1974_s1 + $0x60] sm:$0xff]   ;;  %v29_v26 = vld [vmem:[%s1973_s0 + $0x70] sm:$0xff] }
   0x9   :  { %1207 = vmatpush3.bf16.msra.mxu1 %v1437_v12  ;;  %v1590_v24 = vld [vmem:[%s1974_s1 + $0xa0] sm:$0xff]   ;;  %v30_v25 = vld [vmem:[%s1973_s0 + $0x78] sm:$0xff]  ;;  %v1445_v27 = vld [vmem:[%s1974_s1 + $0x68] sm:$0xff]  }
   0xa   :  { %63 = vperm.xlu1 %1434, %v20_v5   ;;  %60 = vperm.xlu0 %1433, %v19_v6   ;;  %v1606_v28 = vld [vmem:[%s1974_s1 + $0xa8] sm:$0xff]   ;;  %v31_v30 = vld [vmem:[%s1973_s0 + $0x80] sm:$0xff]  ;;  %v1447_v31 = vld [vmem:[%s1974_s1 + $0x70] sm:$0xff]  }
   0xb   :  { %1255 = vmatpush3.bf16.msra.mxu0 %v1544_v13  ;;  %1208 = vmatprep.subr.bf16.mxu1 %v1439_v15  ;;  %v32_v29 = vld [vmem:[%s1973_s0 + $0x88] sm:$0xff]  ;;  %v1622_v32 = vld [vmem:[%s1974_s1 + $0xb0] sm:$0xff]  }
   0xc   :  { %1256 = vmatprep.subr.bf16.mxu0 %v1558_v16 }
   0xd   :  { %1209 = vmatpush3.bf16.msra.mxu1 %v1439_v15 }
   0xe   :  { %69 = vperm.xlu1 %1434, %v22_v7   ;;  %66 = vperm.xlu0 %1433, %v21_v8  }
   0xf   :  { %1257 = vmatpush3.bf16.msra.mxu0 %v1558_v16  ;;  %1210 = vmatprep.subr.bf16.mxu1 %v1441_v19 }
  0x10   :  { %1258 = vmatprep.subr.bf16.mxu0 %v1574_v20 }
  0x11   :  { %1211 = vmatpush3.bf16.msra.mxu1 %v1441_v19 }
  0x12   :  { %75 = vperm.xlu1 %1434, %v24_v11   ;;  %72 = vperm.xlu0 %1433, %v23_v14  }
  0x13   :  { %1259 = vmatpush3.bf16.msra.mxu0 %v1574_v20  ;;  %1212 = vmatprep.subr.bf16.mxu1 %v1443_v23 }
  0x14   :  { %1260 = vmatprep.subr.bf16.mxu0 %v1590_v24 }
  0x15   :  { %1213 = vmatpush3.bf16.msra.mxu1 %v1443_v23 }
  0x16   :  { %81 = vperm.xlu1 %1434, %v26_v17   ;;  %78 = vperm.xlu0 %1433, %v25_v18  }
  0x17   :  { %1261 = vmatpush3.bf16.msra.mxu0 %v1590_v24  ;;  %1214 = vmatprep.subr.bf16.mxu1 %v1445_v27 }
  0x18   :  { %1262 = vmatprep.subr.bf16.mxu0 %v1606_v28 }
  0x1a   :  { %87 = vperm.xlu1 %1434, %v28_v21   ;;  %84 = vperm.xlu0 %1433, %v27_v22  }
  0x1e   :  { %93 = vperm.xlu1 %1434, %v30_v25   ;;  %90 = vperm.xlu0 %1433, %v29_v26  }
  0x22   :  { %99 = vperm.xlu1 %1434, %v32_v29   ;;  %96 = vperm.xlu0 %1433, %v31_v30  }
  0x23   :  { %7 = vsyncpa [#allocation3], 0  ;;  %v34_v33 = vld [vmem:[%s1973_s0 + $0x98] sm:$0xff]  ;;  %v33_v34 = vld [vmem:[%s1973_s0 + $0x90] sm:$0xff]  ;;  %1215 = vmatpush3.bf16.msra.mxu1 %v1445_v27  ;;  %1263 = vmatpush3.bf16.msra.mxu0 %v1606_v28  ;;  %v13_v50 = vlaneseq  ;;  %v1484_v58 = vmov 1.0|1.0  }
  0x24   :  { %1216 = vmatprep.subr.bf16.mxu1 %v1447_v31  ;;  %v1449_v35 = vld [vmem:[%s1974_s1 + $0x78] sm:$0xff]   ;;  %1264 = vmatprep.subr.bf16.mxu0 %v1622_v32  ;;  %v36_v37 = vld [vmem:[%s1973_s0 + $0xa8] sm:$0xff]  ;;  %v35_v38 = vld [vmem:[%s1973_s0 + $0xa0] sm:$0xff] }
  0x25   :  { %v1638_v36 = vld [vmem:[%s1974_s1 + $0xb8] sm:$0xff]   ;;  %v1451_v39 = vld [vmem:[%s1974_s1] sm:$0xff]   ;;  %v37_v41 = vld [vmem:[%s1973_s0 + $0xb0] sm:$0xff]  ;;  %v1683_v53 = vand.u32 127, %v13_v50 }
  0x26   :  { %105 = vperm.xlu1 %1434, %v34_v33   ;;  %102 = vperm.xlu0 %1433, %v33_v34   ;;  %v38_v40 = vld [vmem:[%s1973_s0 + $0xb8] sm:$0xff]  ;;  %v40_v42 = vld [vmem:[%s1973_s0 + $0xc8] sm:$0xff]  ;;  %v39_v43 = vld [vmem:[%s1973_s0 + $0xc0] sm:$0xff] }
  0x27   :  { %1217 = vmatpush3.bf16.msra.mxu1 %v1447_v31  ;;  %1265 = vmatpush3.bf16.msra.mxu0 %v1622_v32  ;;  %v42_v44 = vld [vmem:[%s1973_s0 + $0xd8] sm:$0xff]  ;;  %v41_v45 = vld [vmem:[%s1973_s0 + $0xd0] sm:$0xff]  ;;  %v44_v46 = vld [vmem:[%s1973_s0 + $0xe8] sm:$0xff] }
  0x28   :  { %1218 = vmatprep.subr.bf16.mxu1 %v1449_v35  ;;  %1266 = vmatprep.subr.bf16.mxu0 %v1638_v36  ;;  %v43_v47 = vld [vmem:[%s1973_s0 + $0xe0] sm:$0xff]  ;;  %v46_v48 = vld [vmem:[%s1973_s0 + $0xf8] sm:$0xff]  ;;  %v45_v49 = vld [vmem:[%s1973_s0 + $0xf0] sm:$0xff] }
  0x29   :  { %v1452_v61 = vld [vmem:[%s1974_s1 + $0x8] sm:$0xff]   ;;  %v1453_v63 = vld [vmem:[%s1974_s1 + $0x10] sm:$0xff]   ;;  %v1454_v5 = vld [vmem:[%s1974_s1 + $0x18] sm:$0xff]  }
  0x2a   :  { %111 = vperm.xlu1 %1434, %v36_v37   ;;  %108 = vperm.xlu0 %1433, %v35_v38   ;;  %v1455_v7 = vld [vmem:[%s1974_s1 + $0x20] sm:$0xff]   ;;  %v1457_v15 = vld [vmem:[%s1974_s1 + $0x30] sm:$0xff]   ;;  %v1458_v19 = vld [vmem:[%s1974_s1 + $0x38] sm:$0xff]  }
  0x2b   :  { %1219 = vmatpush3.bf16.msra.mxu1 %v1449_v35  ;;  %1267 = vmatpush3.bf16.msra.mxu0 %v1638_v36 }
  0x2c   :  { %1348 = vmatprep.subr.bf16.mxu1 %v1533_v10  ;;  %1300 = vmatprep.subr.bf16.mxu0 %v1451_v39 }
  0x2e   :  { %117 = vperm.xlu1 %1434, %v38_v40   ;;  %114 = vperm.xlu0 %1433, %v37_v41  }
  0x32   :  { %123 = vperm.xlu1 %1434, %v40_v42   ;;  %120 = vperm.xlu0 %1433, %v39_v43  }
  0x36   :  { %129 = vperm.xlu1 %1434, %v42_v44   ;;  %126 = vperm.xlu0 %1433, %v41_v45  }
  0x3a   :  { %135 = vperm.xlu1 %1434, %v44_v46   ;;  %132 = vperm.xlu0 %1433, %v43_v47  }
  0x3e   :  { %141 = vperm.xlu1 %1434, %v46_v48   ;;  %138 = vperm.xlu0 %1433, %v45_v49  }
  0x81   :  { %v55_v51 = vpop.permute.xlu1 %54  ;;  %v49_v52 = vpop.permute.xlu0 %48 }
  0x82   :  { %vm145_vm0 = vcmp.eq.s32.totalorder %v1683_v53, %v55_v51  ;;  %vm143_vm3 = vcmp.eq.s32.totalorder %v1683_v53, %v49_v52 }
  0x85   :  { %v58_v54 = vpop.permute.xlu1 %57  ;;  %v52_v55 = vpop.permute.xlu0 %51 }
  0x86   :  { %vm146_vm1 = vcmp.eq.s32.totalorder %v1683_v53, %v58_v54  ;;  %vm144_vm2 = vcmp.eq.s32.totalorder %v1683_v53, %v52_v55 }
  0x87   :  { %vm1689_vm4 = vmpackc.low %vm146_vm1, %vm145_vm0 }
  0x88   :  { %vm1693_vm5 = vmpackc.low %vm144_vm2, %vm143_vm3 }
  0x89   :  { %1220 = vmatprep.mubr.msk.bf16.mxu1 %vm1693_vm5, %v1484_v58  ;;  %1268 = vmatprep.mubr.msk.bf16.mxu0 %vm1693_vm5, %v1484_v58  ;;  %v64_v59 = vpop.permute.xlu1 %63  ;;  %v61_v60 = vpop.permute.xlu0 %60 }
  0x8a   :  { %vm148_vm6 = vcmp.eq.s32.totalorder %v1683_v53, %v64_v59  ;;  %vm147_vm7 = vcmp.eq.s32.totalorder %v1683_v53, %v61_v60  ;;  %1221 = vmatmul.mubr.msk.bf16.vlgmr.msra.gmra.mrb[0].mxu1 %vm1689_vm4, %v1484_v58  ;;  %1269 = vmatmul.mubr.msk.bf16.vlgmr.msra.gmra.mrb[0].mxu0 %vm1689_vm4, %v1484_v58 }
  0x8b   :  { %vm1714_vm8 = vmpackc.low %vm148_vm6, %vm147_vm7  ;;  %1356 = vmatpush3.bf16.msra.mxu1 %v1533_v10  ;;  %1301 = vmatpush3.bf16.msra.mxu0 %v1451_v39 }
  0x8c   :  { %1224 = vmatprep.mubr.msk.bf16.mxu1 %vm1714_vm8, %v1484_v58  ;;  %1272 = vmatprep.mubr.msk.bf16.mxu0 %vm1714_vm8, %v1484_v58 }
  0x8d   :  { %1302 = vmatprep.subr.bf16.mxu0 %v1452_v61  ;;  %v70_v0 = vpop.permute.xlu1 %69  ;;  %v67_v1 = vpop.permute.xlu0 %66  ;;  %1349 = vmatprep.subr.bf16.mxu1 %v1544_v13 }
  0x8e   :  { %vm150_vm9 = vcmp.eq.s32.totalorder %v1683_v53, %v70_v0  ;;  %vm149_vm10 = vcmp.eq.s32.totalorder %v1683_v53, %v67_v1 }
  0x8f   :  { %vm1731_vm11 = vmpackc.low %vm150_vm9, %vm149_vm10  ;;  %1303 = vmatpush3.bf16.msra.mxu0 %v1452_v61  ;;  %1357 = vmatpush3.bf16.msra.mxu1 %v1544_v13  ;;  %v1456_v13 = vld [vmem:[%s1974_s1 + $0x28] sm:$0xff]   ;;  %s1485_s1 = smov [#allocation2]  }
  0x90   :  { %1304 = vmatprep.subr.bf16.mxu0 %v1453_v63  ;;  %1350 = vmatprep.subr.bf16.mxu1 %v1558_v16  ;;  %s969_s8 = sshll.u32 %s1485_s1, 4  ;;  %s970_s8 = int_to_ptr.vmem [resolvable:$true] %s969_s8 }
  0x91   :  { %v76_v3 = vpop.permute.xlu1 %75  ;;  %v73_v4 = vpop.permute.xlu0 %72  ;;  %s1459_s9 = scalar_lea.vmem %s970_s8, 4096  ;;  %p1464_p1 = scmp.lt.s32.totalorder %s970_s8, %s970_s8 }
  0x92   :  { %vm152_vm12 = vcmp.eq.s32.totalorder %v1683_v53, %v76_v3  ;;  %vm151_vm13 = vcmp.eq.s32.totalorder %v1683_v53, %v73_v4  ;;  %1225 = vmatmul.mubr.msk.bf16.gmra.mrb[4].mxu1 %vm1731_vm11, %v1484_v58  ;;  %1273 = vmatmul.mubr.msk.bf16.gmra.mrb[4].mxu0 %vm1731_vm11, %v1484_v58  ;;  %p1460_p0 = scmp.ne.s32.totalorder %s970_s8, %s1459_s9  ;;  %p1465_p2 = scmp.lt.s32.totalorder %s1459_s9, %s1459_s9 }
  0x93   :  { %vm1748_vm14 = vmpackc.low %vm152_vm12, %vm151_vm13  ;;  %1305 = vmatpush3.bf16.msra.mxu0 %v1453_v63  ;;  %1358 = vmatpush3.bf16.msra.mxu1 %v1558_v16 }
  0x94   :  { %1228 = vmatprep.mubr.msk.bf16.mxu1 %vm1748_vm14, %v1484_v58  ;;  %1276 = vmatprep.mubr.msk.bf16.mxu0 %vm1748_vm14, %v1484_v58  ;;  %p1466_p3 = por %p1465_p2, %p1464_p1 }
  0x95   :  { %1306 = vmatprep.subr.bf16.mxu0 %v1454_v5  ;;  %v82_v8 = vpop.permute.xlu1 %81  ;;  %v79_v9 = vpop.permute.xlu0 %78  ;;  %1351 = vmatprep.subr.bf16.mxu1 %v1574_v20 }
  0x96   :  { %vm154_vm15 = vcmp.eq.s32.totalorder %v1683_v53, %v82_v8  ;;  %vm153_vm0 = vcmp.eq.s32.totalorder %v1683_v53, %v79_v9  ;;  %p1467_p4 = pnand %p1466_p3, %p1460_p0 }
  0x97   :  { %vm1765_vm1 = vmpackc.low %vm154_vm15, %vm153_vm0  ;;  %1307 = vmatpush3.bf16.msra.mxu0 %v1454_v5  ;;  %1359 = vmatpush3.bf16.msra.mxu1 %v1574_v20 }
  0x98   :  { %1308 = vmatprep.subr.bf16.mxu0 %v1455_v7  ;;  %1352 = vmatprep.subr.bf16.mxu1 %v1590_v24 }
  0x99   :  { %v88_v11 = vpop.permute.xlu1 %87  ;;  %v85_v12 = vpop.permute.xlu0 %84 }
  0x9a   :  { %vm156_vm2 = vcmp.eq.s32.totalorder %v1683_v53, %v88_v11  ;;  %vm155_vm3 = vcmp.eq.s32.totalorder %v1683_v53, %v85_v12  ;;  %1229 = vmatmul.mubr.msk.bf16.gmra.mrb[8].mxu1 %vm1765_vm1, %v1484_v58  ;;  %1277 = vmatmul.mubr.msk.bf16.gmra.mrb[8].mxu0 %vm1765_vm1, %v1484_v58 }
  0x9b   :  { %vm1782_vm6 = vmpackc.low %vm156_vm2, %vm155_vm3  ;;  %1309 = vmatpush3.bf16.msra.mxu0 %v1455_v7  ;;  %1360 = vmatpush3.bf16.msra.mxu1 %v1590_v24 }
  0x9c   :  { %1232 = vmatprep.mubr.msk.bf16.mxu1 %vm1782_vm6, %v1484_v58  ;;  %1280 = vmatprep.mubr.msk.bf16.mxu0 %vm1782_vm6, %v1484_v58 }
  0x9d   :  { %1310 = vmatprep.subr.bf16.mxu0 %v1456_v13  ;;  %v94_v16 = vpop.permute.xlu1 %93  ;;  %v91_v17 = vpop.permute.xlu0 %90  ;;  %1353 = vmatprep.subr.bf16.mxu1 %v1606_v28 }
  0x9e   :  { %vm158_vm7 = vcmp.eq.s32.totalorder %v1683_v53, %v94_v16  ;;  %vm157_vm9 = vcmp.eq.s32.totalorder %v1683_v53, %v91_v17 }
  0x9f   :  { %vm1799_vm10 = vmpackc.low %vm158_vm7, %vm157_vm9  ;;  %1311 = vmatpush3.bf16.msra.mxu0 %v1456_v13  ;;  %1361 = vmatpush3.bf16.msra.mxu1 %v1606_v28 }
  0xa0   :  { %1312 = vmatprep.subr.bf16.mxu0 %v1457_v15  ;;  %1354 = vmatprep.subr.bf16.mxu1 %v1622_v32 }
  0xa1   :  { %v100_v20 = vpop.permute.xlu1 %99  ;;  %v97_v21 = vpop.permute.xlu0 %96 }
  0xa2   :  { %vm160_vm12 = vcmp.eq.s32.totalorder %v1683_v53, %v100_v20  ;;  %vm159_vm13 = vcmp.eq.s32.totalorder %v1683_v53, %v97_v21  ;;  %1233 = vmatmul.mubr.msk.bf16.gmra.mrb[12].mxu1 %vm1799_vm10, %v1484_v58  ;;  %1281 = vmatmul.mubr.msk.bf16.gmra.mrb[12].mxu0 %vm1799_vm10, %v1484_v58 }
  0xa3   :  { %vm1816_vm15 = vmpackc.low %vm160_vm12, %vm159_vm13  ;;  %1313 = vmatpush3.bf16.msra.mxu0 %v1457_v15  ;;  %1316 = vmatprep.mubr.msk.bf16.mxu0 %vm1693_vm5, %v1484_v58 }
  0xa4   :  { %1236 = vmatprep.mubr.msk.bf16.mxu1 %vm1816_vm15, %v1484_v58  ;;  %1314 = vmatprep.subr.bf16.mxu0 %v1458_v19 }
  0xa5   :  { %v106_v23 = vpop.permute.xlu1 %105  ;;  %v103_v24 = vpop.permute.xlu0 %102  ;;  %1362 = vmatpush3.bf16.msra.mxu1 %v1622_v32 }
  0xa6   :  { %vm162_vm0 = vcmp.eq.s32.totalorder %v1683_v53, %v106_v23  ;;  %vm161_vm2 = vcmp.eq.s32.totalorder %v1683_v53, %v103_v24  ;;  %1355 = vmatprep.subr.bf16.mxu1 %v1638_v36 }
  0xa7   :  { %vm1830_vm3 = vmpackc.low %vm162_vm0, %vm161_vm2  ;;  %1315 = vmatpush3.bf16.msra.mxu0 %v1458_v19 }
  0xa9   :  { %v112_v26 = vpop.permute.xlu1 %111  ;;  %v109_v27 = vpop.permute.xlu0 %108  ;;  %1363 = vmatpush3.bf16.msra.mxu1 %v1638_v36 }
  0xaa   :  { %vm164_vm5 = vcmp.eq.s32.totalorder %v1683_v53, %v112_v26  ;;  %vm163_vm7 = vcmp.eq.s32.totalorder %v1683_v53, %v109_v27  ;;  %1237 = vmatmul.mubr.msk.bf16.gmra.mrb[16].mxu1 %vm1830_vm3, %v1484_v58  ;;  %1317 = vmatmul.mubr.msk.bf16.vlgmr.msra.gmra.mrb[0].mxu0 %vm1689_vm4, %v1484_v58 }
  0xab   :  { %vm1843_vm9 = vmpackc.low %vm164_vm5, %vm163_vm7  ;;  %1320 = vmatprep.mubr.msk.bf16.mxu0 %vm1714_vm8, %v1484_v58 }
  0xac   :  { %1240 = vmatprep.mubr.msk.bf16.mxu1 %vm1843_vm9, %v1484_v58 }
  0xad   :  { %v118_v29 = vpop.permute.xlu1 %117  ;;  %v115_v30 = vpop.permute.xlu0 %114 }
  0xae   :  { %vm166_vm12 = vcmp.eq.s32.totalorder %v1683_v53, %v118_v29  ;;  %vm165_vm13 = vcmp.eq.s32.totalorder %v1683_v53, %v115_v30 }
  0xaf   :  { %vm1855_vm0 = vmpackc.low %vm166_vm12, %vm165_vm13 }
  0xb1   :  { %v124_v32 = vpop.permute.xlu1 %123  ;;  %v121_v33 = vpop.permute.xlu0 %120 }
  0xb2   :  { %vm168_vm4 = vcmp.eq.s32.totalorder %v1683_v53, %v124_v32  ;;  %vm167_vm8 = vcmp.eq.s32.totalorder %v1683_v53, %v121_v33  ;;  %1241 = vmatmul.mubr.msk.bf16.gmra.mrb[20].mxu1 %vm1855_vm0, %v1484_v58  ;;  %1321 = vmatmul.mubr.msk.bf16.gmra.mrb[4].mxu0 %vm1731_vm11, %v1484_v58 }
  0xb3   :  { %vm1867_vm2 = vmpackc.low %vm168_vm4, %vm167_vm8  ;;  %1324 = vmatprep.mubr.msk.bf16.mxu0 %vm1748_vm14, %v1484_v58 }
  0xb4   :  { %1244 = vmatprep.mubr.msk.bf16.mxu1 %vm1867_vm2, %v1484_v58 }
  0xb5   :  { %v130_v35 = vpop.permute.xlu1 %129  ;;  %v127_v36 = vpop.permute.xlu0 %126 }
  0xb6   :  { %vm170_vm5 = vcmp.eq.s32.totalorder %v1683_v53, %v130_v35  ;;  %vm169_vm7 = vcmp.eq.s32.totalorder %v1683_v53, %v127_v36 }
  0xb7   :  { %vm1879_vm12 = vmpackc.low %vm170_vm5, %vm169_vm7 }
  0xb9   :  { %v136_v38 = vpop.permute.xlu1 %135  ;;  %v133_v39 = vpop.permute.xlu0 %132 }
  0xba   :  { %vm172_vm11 = vcmp.eq.s32.totalorder %v1683_v53, %v136_v38  ;;  %vm171_vm14 = vcmp.eq.s32.totalorder %v1683_v53, %v133_v39  ;;  %1245 = vmatmul.mubr.msk.bf16.gmra.mrb[24].mxu1 %vm1879_vm12, %v1484_v58  ;;  %1325 = vmatmul.mubr.msk.bf16.gmra.mrb[8].mxu0 %vm1765_vm1, %v1484_v58 }
  0xbb   :  { %vm1891_vm13 = vmpackc.low %vm172_vm11, %vm171_vm14  ;;  %1328 = vmatprep.mubr.msk.bf16.mxu0 %vm1782_vm6, %v1484_v58 }
  0xbc   :  { %1248 = vmatprep.mubr.msk.bf16.mxu1 %vm1891_vm13, %v1484_v58 }
  0xbd   :  { %v142_v41 = vpop.permute.xlu1 %141  ;;  %v139_v42 = vpop.permute.xlu0 %138 }
  0xbe   :  { %vm174_vm4 = vcmp.eq.s32.totalorder %v1683_v53, %v142_v41  ;;  %vm173_vm8 = vcmp.eq.s32.totalorder %v1683_v53, %v139_v42 }
  0xbf   :  { %vm1903_vm5 = vmpackc.low %vm174_vm4, %vm173_vm8 }
  0xc2   :  { %1249 = vmatmul.mubr.msk.bf16.gmra.mrb[28].mxu1 %vm1903_vm5, %v1484_v58  ;;  %1329 = vmatmul.mubr.msk.bf16.gmra.mrb[12].mxu0 %vm1799_vm10, %v1484_v58 }
  0xc3   :  { %1284 = vmatprep.mubr.msk.bf16.mxu1 %vm1816_vm15, %v1484_v58  ;;  %1332 = vmatprep.mubr.msk.bf16.mxu0 %vm1816_vm15, %v1484_v58 }
  0xca   :  { %1285 = vmatmul.mubr.msk.bf16.vlgmr.msra.gmra.mrb[16].mxu1 %vm1830_vm3, %v1484_v58  ;;  %1333 = vmatmul.mubr.msk.bf16.gmra.mrb[16].mxu0 %vm1830_vm3, %v1484_v58 }
  0xcb   :  { %1288 = vmatprep.mubr.msk.bf16.mxu1 %vm1843_vm9, %v1484_v58  ;;  %1336 = vmatprep.mubr.msk.bf16.mxu0 %vm1843_vm9, %v1484_v58 }
  0xd2   :  { %1289 = vmatmul.mubr.msk.bf16.gmra.mrb[20].mxu1 %vm1855_vm0, %v1484_v58  ;;  %1337 = vmatmul.mubr.msk.bf16.gmra.mrb[20].mxu0 %vm1855_vm0, %v1484_v58 }
  0xd3   :  { %1292 = vmatprep.mubr.msk.bf16.mxu1 %vm1867_vm2, %v1484_v58  ;;  %1340 = vmatprep.mubr.msk.bf16.mxu0 %vm1867_vm2, %v1484_v58 }
  0xda   :  { %1293 = vmatmul.mubr.msk.bf16.gmra.mrb[24].mxu1 %vm1879_vm12, %v1484_v58  ;;  %1341 = vmatmul.mubr.msk.bf16.gmra.mrb[24].mxu0 %vm1879_vm12, %v1484_v58 }
  0xdb   :  { %1296 = vmatprep.mubr.msk.bf16.mxu1 %vm1891_vm13, %v1484_v58  ;;  %1344 = vmatprep.mubr.msk.bf16.mxu0 %vm1891_vm13, %v1484_v58 }
  0xe2   :  { %1297 = vmatmul.mubr.msk.bf16.gmra.mrb[28].mxu1 %vm1903_vm5, %v1484_v58  ;;  %1345 = vmatmul.mubr.msk.bf16.gmra.mrb[28].mxu0 %vm1903_vm5, %v1484_v58 }
 0x15d   :  { %v1222_v44 = vpop.f32.mrb[0].mxu1 }
 0x15e   :  { %v338_v45 = vpop.f32.mrb[1].mxu1 }
 0x15f   :  { %v1223_v46 = vpop.f32.mrb[2].mxu1 }
 0x160   :  { %v341_v47 = vpop.f32.mrb[3].mxu1 }
 0x165   :  { %v1226_v48 = vpop.f32.mrb[4].mxu1 }
 0x166   :  { %v354_v49 = vpop.f32.mrb[5].mxu1 }
 0x167   :  { %v1227_v50 = vpop.f32.mrb[6].mxu1 }
 0x168   :  { %v357_v51 = vpop.f32.mrb[7].mxu1 }
 0x16d   :  { %v1230_v52 = vpop.f32.mrb[8].mxu1 }
 0x16e   :  { %v370_v53 = vpop.f32.mrb[9].mxu1 }
 0x16f   :  { %v1231_v54 = vpop.f32.mrb[10].mxu1 }
 0x170   :  { %v373_v55 = vpop.f32.mrb[11].mxu1 }
 0x175   :  { %v1234_v56 = vpop.f32.mrb[12].mxu1 }
 0x176   :  { %v386_v57 = vpop.f32.mrb[13].mxu1 }
 0x177   :  { %v1235_v59 = vpop.f32.mrb[14].mxu1 }
 0x178   :  { %v389_v60 = vpop.f32.mrb[15].mxu1 }
 0x17d   :  { %v1318_v61 = vpop.f32.mrb[0].mxu0 }
 0x17e   :  { %v782_v62 = vadd.f32 %v1318_v61, %v1222_v44  ;;  %v773_v63 = vpop.f32.mrb[1].mxu0 }
 0x17f   :  { %v774_v58 = vadd.f32 %v773_v63, %v338_v45  ;;  %v1319_v0 = vpop.f32.mrb[2].mxu0 }
 0x180   :  { %934 = vst [vmem:[#allocation2 + $0x10] sm:$0xff] %v782_v62  ;;  %v785_v1 = vadd.f32 %v1319_v0, %v1223_v46  ;;  %v776_v2 = vpop.f32.mrb[3].mxu0 }
 0x181   :  { %932 = vst [vmem:[#allocation2] sm:$0xff] %v774_v58  ;;  %v777_v3 = vadd.f32 %v776_v2, %v341_v47 }
 0x182   :  { %935 = vst [vmem:[#allocation2 + $0x18] sm:$0xff] %v785_v1 }
 0x183   :  { %933 = vst [vmem:[#allocation2 + $0x8] sm:$0xff] %v777_v3 }
 0x185   :  { %v1322_v4 = vpop.f32.mrb[4].mxu0 }
 0x186   :  { %v798_v5 = vadd.f32 %v1322_v4, %v1226_v48  ;;  %v789_v6 = vpop.f32.mrb[5].mxu0 }
 0x187   :  { %v790_v7 = vadd.f32 %v789_v6, %v354_v49  ;;  %v1323_v8 = vpop.f32.mrb[6].mxu0 }
 0x188   :  { %938 = vst [vmem:[#allocation2 + $0x30] sm:$0xff] %v798_v5  ;;  %v801_v9 = vadd.f32 %v1323_v8, %v1227_v50  ;;  %v792_v10 = vpop.f32.mrb[7].mxu0 }
 0x189   :  { %936 = vst [vmem:[#allocation2 + $0x20] sm:$0xff] %v790_v7  ;;  %v793_v11 = vadd.f32 %v792_v10, %v357_v51 }
 0x18a   :  { %939 = vst [vmem:[#allocation2 + $0x38] sm:$0xff] %v801_v9 }
 0x18b   :  { %937 = vst [vmem:[#allocation2 + $0x28] sm:$0xff] %v793_v11 }
 0x18d   :  { %v1326_v12 = vpop.f32.mrb[8].mxu0 }
 0x18e   :  { %v814_v13 = vadd.f32 %v1326_v12, %v1230_v52  ;;  %v805_v14 = vpop.f32.mrb[9].mxu0 }
 0x18f   :  { %v806_v15 = vadd.f32 %v805_v14, %v370_v53  ;;  %v1327_v16 = vpop.f32.mrb[10].mxu0 }
 0x190   :  { %942 = vst [vmem:[#allocation2 + $0x50] sm:$0xff] %v814_v13  ;;  %v817_v17 = vadd.f32 %v1327_v16, %v1231_v54  ;;  %v808_v18 = vpop.f32.mrb[11].mxu0 }
 0x191   :  { %940 = vst [vmem:[#allocation2 + $0x40] sm:$0xff] %v806_v15  ;;  %v809_v19 = vadd.f32 %v808_v18, %v373_v55 }
 0x192   :  { %943 = vst [vmem:[#allocation2 + $0x58] sm:$0xff] %v817_v17 }
 0x193   :  { %941 = vst [vmem:[#allocation2 + $0x48] sm:$0xff] %v809_v19 }
 0x195   :  { %v1330_v20 = vpop.f32.mrb[12].mxu0 }
 0x196   :  { %v830_v21 = vadd.f32 %v1330_v20, %v1234_v56  ;;  %v821_v22 = vpop.f32.mrb[13].mxu0 }
 0x197   :  { %v822_v23 = vadd.f32 %v821_v22, %v386_v57  ;;  %v1331_v24 = vpop.f32.mrb[14].mxu0 }
 0x198   :  { %946 = vst [vmem:[#allocation2 + $0x70] sm:$0xff] %v830_v21  ;;  %v833_v25 = vadd.f32 %v1331_v24, %v1235_v59  ;;  %v824_v26 = vpop.f32.mrb[15].mxu0 }
 0x199   :  { %944 = vst [vmem:[#allocation2 + $0x60] sm:$0xff] %v822_v23  ;;  %v825_v27 = vadd.f32 %v824_v26, %v389_v60 }
 0x19a   :  { %947 = vst [vmem:[#allocation2 + $0x78] sm:$0xff] %v833_v25 }
 0x19b   :  { %945 = vst [vmem:[#allocation2 + $0x68] sm:$0xff] %v825_v27 }
 0x19d   :  { %v1286_v28 = vpop.f32.mrb[16].mxu1  ;;  %v1334_v29 = vpop.f32.mrb[16].mxu0 }
 0x19e   :  { %v1380_v30 = vadd.f32 %v1334_v29, %v1286_v28  ;;  %v628_v31 = vpop.f32.mrb[17].mxu1  ;;  %v837_v32 = vpop.f32.mrb[17].mxu0 }
 0x19f   :  { %v1381_v33 = vadd.f32 %v837_v32, %v628_v31  ;;  %v1287_v34 = vpop.f32.mrb[18].mxu1  ;;  %v1335_v35 = vpop.f32.mrb[18].mxu0 }
 0x1a0   :  { %950 = vst [vmem:[#allocation2 + $0x90] sm:$0xff] %v1380_v30  ;;  %v1382_v36 = vadd.f32 %v1335_v35, %v1287_v34  ;;  %v631_v37 = vpop.f32.mrb[19].mxu1  ;;  %v840_v38 = vpop.f32.mrb[19].mxu0 }
 0x1a1   :  { %948 = vst [vmem:[#allocation2 + $0x80] sm:$0xff] %v1381_v33  ;;  %v1383_v39 = vadd.f32 %v840_v38, %v631_v37 }
 0x1a2   :  { %951 = vst [vmem:[#allocation2 + $0x98] sm:$0xff] %v1382_v36 }
 0x1a3   :  { %949 = vst [vmem:[#allocation2 + $0x88] sm:$0xff] %v1383_v39 }
 0x1a5   :  { %v1290_v40 = vpop.f32.mrb[20].mxu1  ;;  %v1338_v41 = vpop.f32.mrb[20].mxu0 }
 0x1a6   :  { %v1384_v42 = vadd.f32 %v1338_v41, %v1290_v40  ;;  %v644_v43 = vpop.f32.mrb[21].mxu1  ;;  %v853_v44 = vpop.f32.mrb[21].mxu0 }
 0x1a7   :  { %v1385_v45 = vadd.f32 %v853_v44, %v644_v43  ;;  %v1291_v46 = vpop.f32.mrb[22].mxu1  ;;  %v1339_v47 = vpop.f32.mrb[22].mxu0 }
 0x1a8   :  { %954 = vst [vmem:[#allocation2 + $0xb0] sm:$0xff] %v1384_v42  ;;  %v1386_v48 = vadd.f32 %v1339_v47, %v1291_v46  ;;  %v647_v49 = vpop.f32.mrb[23].mxu1  ;;  %v856_v50 = vpop.f32.mrb[23].mxu0 }
 0x1a9   :  { %952 = vst [vmem:[#allocation2 + $0xa0] sm:$0xff] %v1385_v45  ;;  %v1387_v51 = vadd.f32 %v856_v50, %v647_v49 }
 0x1aa   :  { %955 = vst [vmem:[#allocation2 + $0xb8] sm:$0xff] %v1386_v48 }
 0x1ab   :  { %953 = vst [vmem:[#allocation2 + $0xa8] sm:$0xff] %v1387_v51 }
 0x1ad   :  { %v1294_v52 = vpop.f32.mrb[24].mxu1  ;;  %v1342_v53 = vpop.f32.mrb[24].mxu0 }
 0x1ae   :  { %v1388_v54 = vadd.f32 %v1342_v53, %v1294_v52  ;;  %v660_v55 = vpop.f32.mrb[25].mxu1  ;;  %v869_v56 = vpop.f32.mrb[25].mxu0 }
 0x1af   :  { %v1389_v57 = vadd.f32 %v869_v56, %v660_v55  ;;  %v1295_v59 = vpop.f32.mrb[26].mxu1  ;;  %v1343_v60 = vpop.f32.mrb[26].mxu0 }
 0x1b0   :  { %958 = vst [vmem:[#allocation2 + $0xd0] sm:$0xff] %v1388_v54  ;;  %v1390_v61 = vadd.f32 %v1343_v60, %v1295_v59  ;;  %v663_v62 = vpop.f32.mrb[27].mxu1  ;;  %v872_v63 = vpop.f32.mrb[27].mxu0 }
 0x1b1   :  { %956 = vst [vmem:[#allocation2 + $0xc0] sm:$0xff] %v1389_v57  ;;  %v1391_v58 = vadd.f32 %v872_v63, %v663_v62 }
 0x1b2   :  { %959 = vst [vmem:[#allocation2 + $0xd8] sm:$0xff] %v1390_v61 }
 0x1b3   :  { %957 = vst [vmem:[#allocation2 + $0xc8] sm:$0xff] %v1391_v58 }
 0x1b5   :  { %v1298_v0 = vpop.f32.mrb[28].mxu1  ;;  %v1346_v1 = vpop.f32.mrb[28].mxu0 }
 0x1b6   :  { %v1392_v2 = vadd.f32 %v1346_v1, %v1298_v0  ;;  %v676_v3 = vpop.f32.mrb[29].mxu1  ;;  %v885_v4 = vpop.f32.mrb[29].mxu0 }
 0x1b7   :  { %v1393_v5 = vadd.f32 %v885_v4, %v676_v3  ;;  %v1299_v6 = vpop.f32.mrb[30].mxu1  ;;  %v1347_v7 = vpop.f32.mrb[30].mxu0 }
 0x1b8   :  { %962 = vst [vmem:[#allocation2 + $0xf0] sm:$0xff] %v1392_v2  ;;  %v1394_v8 = vadd.f32 %v1347_v7, %v1299_v6  ;;  %v679_v9 = vpop.f32.mrb[31].mxu1  ;;  %v888_v10 = vpop.f32.mrb[31].mxu0 }
 0x1b9   :  { %960 = vst [vmem:[#allocation2 + $0xe0] sm:$0xff] %v1393_v5  ;;  %v1395_v11 = vadd.f32 %v888_v10, %v679_v9 }
 0x1ba   :  { %963 = vst [vmem:[#allocation2 + $0xf8] sm:$0xff] %v1394_v8 }
 0x1bb   :  { %961 = vst [vmem:[#allocation2 + $0xe8] sm:$0xff] %v1395_v11 }
 0x1bc   :  { %1470 = shalt.err (!%p1467_p4)
}
 0x1bd   :  { %s1471_s12 = scalar_lea.hbm %s1975_s2, 4096 }
 0x1be   :  { %p1472_p5 = scmp.ne.s32.totalorder %s1975_s2, %s1471_s12  ;;  %p1475_p6 = scmp.lt.u32.totalorder %s1471_s12, %s1975_s2 }
 0x1c0   :  { %p1477_p7 = pnand %p1475_p6, %p1472_p5 }
 0x1c2   :  { %1480 = shalt.err (!%p1477_p7)
}
 0x1c3   :  { %s1486_s17 = smov 128   ;;  %s1487_s18 = smov 8  }
 0x1c4   :  { %975 = dma.vmem_to_hbm [thread:$0]  %s970_s8, 4096, %s1975_s2, [#allocation3], %s1486_s17, %s1486_s17, %s1487_s18  }
 0x1c5   :  { %1481 = dma.done.wait [#allocation3], 4096  }
 0x1c6   :  { %1482 = vsyncadd [#allocation3], 4294963200 }
 0x1c7   :  { %979 = vsyncpa [#allocation3], 1 }

</bundles_post_ra>
